<compile_context>
chip_gen: v6e
topology: v6e:2x2x1
jax: 0.10.0
libtpu: 0.0.40
codegen_flags: <defaults>
</compile_context>

<pallas_src>
import numpy as np
import jax
import jax.numpy as jnp
from jax.experimental import pallas as pl
from jax.experimental.pallas import tpu as pltpu


def build_ee_static_weight(nup, ndown):
    """Static Pade e-e cusp weights b_ij on the strict upper triangle (reference only)."""
    spin = np.array([0] * nup + [1] * ndown)
    same = spin[:, None] == spin[None, :]
    w = np.where(same, 0.25, 0.5).astype(np.float32)
    w = np.triu(w, k=1)
    return jnp.asarray(w)


def make_jastrow_kernel(nup, ndown, natom):
    """Build the Pallas kernel with the electron/atom loops statically unrolled."""
    nelec = nup + ndown
    spin = [0] * nup + [1] * ndown

    def kernel(params_ref, atoms_ref, x_ref, y_ref, z_ref, out_ref):
        # params_ref: SMEM [w_ee, w_en]; atoms_ref: SMEM flat (natom*3,)
        # x/y/z_ref: VMEM (Nelec, TB) with batch on lanes; out_ref: VMEM (1, TB)
        w_ee = params_ref[0]
        w_en = params_ref[1]

        X = x_ref[...]   # (Ne, TB)
        Y = y_ref[...]
        Z = z_ref[...]

        s = jnp.zeros(out_ref.shape, jnp.float32)   # (1, TB) accumulator (s_ee + s_en)

        for i in range(nelec):
            xi = X[i:i + 1, :]
            yi = Y[i:i + 1, :]
            zi = Z[i:i + 1, :]

            # ---- electron-electron pairs (i < j), cusp constant baked in ----
            for j in range(i + 1, nelec):
                b = 0.25 if spin[i] == spin[j] else 0.5
                dx = xi - X[j:j + 1, :]
                dy = yi - Y[j:j + 1, :]
                dz = zi - Z[j:j + 1, :]
                r = jnp.sqrt(dx * dx + dy * dy + dz * dz)           # (1, TB)
                inv = pl.reciprocal(1.0 + w_ee * r, approx=False)   # EUP reciprocal
                s = s + b * (r * inv)

            # ---- electron-nuclei term ----
            for a in range(natom):
                ax = atoms_ref[3 * a + 0]
                ay = atoms_ref[3 * a + 1]
                az = atoms_ref[3 * a + 2]
                dx = xi - ax
                dy = yi - ay
                dz = zi - az
                r = jnp.sqrt(dx * dx + dy * dy + dz * dz)           # (1, TB)
                inv = pl.reciprocal(1.0 + w_en * r, approx=False)
                s = s - r * inv

        # fused exp(s_ee + s_en) == exp(s_ee) * exp(s_en)  (get_combined_values)
        out_ref[...] = jnp.exp(s)

    return kernel


def jastrow_factor_combined_forward(pos, atomic_pos, nup, ndown, w_ee, w_en,
                                    derivative=0, sum_grad=True, batch_tile=128):
    """Pallas equivalent of JastrowFactorCombinedTerms.forward (derivative=0)."""
    if derivative != 0:
        # TODO(synk): derivative=1 / derivative=2 branches (product rule over term
        # gradients / laplacians) are not ported; only the derivative=0 forward is implemented.
        raise NotImplementedError("only derivative=0 is implemented in the Pallas kernel")

    nbatch, nelec3 = pos.shape
    nelec = nup + ndown
    assert nelec3 == nelec * 3
    natom = atomic_pos.shape[0]

    # Put batch on the lane axis: (3, Nelec, Nbatch_pad), then split into x/y/z slabs.
    # Keep >= 2 grid steps so the 'parallel' axis can shard across v7x's two TensorCores.
    steps = max(-(-nbatch // batch_tile), 2)
    nbatch_pad = steps * batch_tile
    xyz = pos.reshape(nbatch, nelec, 3).astype(jnp.float32)
    coords = jnp.transpose(xyz, (2, 1, 0))                      # (3, Nelec, Nbatch)
    coords = jnp.pad(coords, ((0, 0), (0, 0), (0, nbatch_pad - nbatch)))
    x, y, z = coords[0], coords[1], coords[2]                   # each (Nelec, Nbatch_pad)

    params = jnp.asarray([w_ee, w_en], dtype=jnp.float32)
    atoms_flat = jnp.asarray(atomic_pos, dtype=jnp.float32).reshape(-1)  # (natom*3,)

    npairs = nelec * (nelec - 1) // 2
    cost = pl.CostEstimate(
        flops=int(nbatch_pad * (npairs + nelec * natom) * 10),
        transcendentals=int(nbatch_pad * (npairs + nelec * natom + 1)),
        bytes_accessed=int(nbatch_pad * nelec * 3 * 4 + nbatch_pad * 4),
    )

    kernel = make_jastrow_kernel(nup, ndown, natom)

    out = pl.pallas_call(
        kernel,
        out_shape=jax.ShapeDtypeStruct((1, nbatch_pad), jnp.float32),
        grid=(steps,),
        in_specs=[
            pl.BlockSpec(memory_space=pltpu.MemorySpace.SMEM),             # [w_ee, w_en]
            pl.BlockSpec(memory_space=pltpu.MemorySpace.SMEM),             # atoms (flat)
            pl.BlockSpec((nelec, batch_tile), lambda b: (0, b)),           # x coords
            pl.BlockSpec((nelec, batch_tile), lambda b: (0, b)),           # y coords
            pl.BlockSpec((nelec, batch_tile), lambda b: (0, b)),           # z coords
        ],
        out_specs=pl.BlockSpec((1, batch_tile), lambda b: (0, b)),         # lane-dense output
        compiler_params=pltpu.CompilerParams(dimension_semantics=("parallel",)),
        cost_estimate=cost,
    )(params, atoms_flat, x, y, z)

    # drop batch padding, restore (Nbatch, 1) as in the torch module
    return out[0, :nbatch].reshape(nbatch, 1)


def _reference(pos, atomic_pos, wmat_ee, w_ee, w_en):
    """Pure-JAX reference of the same math (torch-module-faithful)."""
    nbatch = pos.shape[0]
    nelec = wmat_ee.shape[0]
    xyz = pos.reshape(nbatch, nelec, 3)
    d_ee = jnp.sqrt(jnp.sum((xyz[:, :, None, :] - xyz[:, None, :, :]) ** 2, axis=-1))
    s_ee = jnp.sum(wmat_ee[None] * d_ee / (1.0 + w_ee * d_ee), axis=(1, 2))
    d_en = jnp.sqrt(jnp.sum((xyz[:, :, None, :] - atomic_pos[None, None]) ** 2, axis=-1))
    s_en = jnp.sum(-d_en / (1.0 + w_en * d_en), axis=(1, 2))
    return (jnp.exp(s_ee) * jnp.exp(s_en))[:, None]


if __name__ == "__main__":
    # small, module-consistent shapes
    nup, ndown = 2, 2
    nelec = nup + ndown          # 4 electrons
    nbatch = 16                  # Nbatch
    ndim = 3

    # deterministic "parameters" of the module (__init__ state)
    atomic_pos = jnp.asarray([[0.0, 0.0, -0.7],
                              [0.0, 0.0, 0.7]], dtype=jnp.float32)   # 2 nuclei (H2-like)
    wmat_ee = build_ee_static_weight(nup, ndown)                     # (4, 4) cusp weights (ref only)
    w_ee = 1.0   # PadeJastrowKernelElecElec default learnable weight
    w_en = 1.0   # PadeJastrowKernelElecNuc default learnable weight

    key = jax.random.PRNGKey(0)
    pos = jax.random.normal(key, (nbatch, nelec * ndim), dtype=jnp.float32)

    out = jastrow_factor_combined_forward(pos, atomic_pos, nup, ndown, w_ee, w_en)
    out = jax.block_until_ready(out)

    ref = _reference(pos, atomic_pos, wmat_ee, w_ee, w_en)
    assert out.shape == (nbatch, 1)
    np.testing.assert_allclose(np.asarray(out), np.asarray(ref), rtol=1e-5, atol=1e-6)
    print("KERNEL_OK")
</pallas_src>

<mosaic_0001>
module attributes {stable_mosaic.version = 11 : i64} {
  func.func @kernel(%arg0: i32, %arg1: memref<2xf32, #tpu.memory_space<smem>>, %arg2: memref<6xf32, #tpu.memory_space<smem>>, %arg3: memref<4x128xf32, #tpu.memory_space<vmem>>, %arg4: memref<4x128xf32, #tpu.memory_space<vmem>>, %arg5: memref<4x128xf32, #tpu.memory_space<vmem>>, %arg6: memref<1x128xf32, #tpu.memory_space<vmem>>) attributes {dimension_semantics = [#tpu.dimension_semantics<parallel>], iteration_bounds = array<i64: 2>, scalar_prefetch = 0 : i64, scratch_operands = 0 : i64, tpu.core_type = #tpu.core_type<tc>, window_params = [{transform_indices = @transform_0, window_bounds = array<i64: 2>}, {transform_indices = @transform_1, window_bounds = array<i64: 6>}, {transform_indices = @transform_2, window_bounds = array<i64: 4, 128>}, {transform_indices = @transform_3, window_bounds = array<i64: 4, 128>}, {transform_indices = @transform_4, window_bounds = array<i64: 4, 128>}, {transform_indices = @transform_5, window_bounds = array<i64: 1, 128>}]} {
    %c0 = arith.constant 0 : index
    %0 = memref.load %arg1[%c0] : memref<2xf32, #tpu.memory_space<smem>>
    %c1 = arith.constant 1 : index
    %1 = memref.load %arg1[%c1] : memref<2xf32, #tpu.memory_space<smem>>
    %c0_0 = arith.constant 0 : index
    %c0_1 = arith.constant 0 : index
    %2 = vector.load %arg3[%c0_0, %c0_1] : memref<4x128xf32, #tpu.memory_space<vmem>>, vector<4x128xf32>
    %c0_2 = arith.constant 0 : index
    %c0_3 = arith.constant 0 : index
    %3 = vector.load %arg4[%c0_2, %c0_3] : memref<4x128xf32, #tpu.memory_space<vmem>>, vector<4x128xf32>
    %c0_4 = arith.constant 0 : index
    %c0_5 = arith.constant 0 : index
    %4 = vector.load %arg5[%c0_4, %c0_5] : memref<4x128xf32, #tpu.memory_space<vmem>>, vector<4x128xf32>
    %cst = arith.constant 0.000000e+00 : f32
    %5 = vector.broadcast %cst : f32 to vector<1x128xf32>
    %6 = vector.extract_strided_slice %2 {offsets = [0, 0], sizes = [1, 128], strides = [1, 1]} : vector<4x128xf32> to vector<1x128xf32>
    %7 = vector.extract_strided_slice %3 {offsets = [0, 0], sizes = [1, 128], strides = [1, 1]} : vector<4x128xf32> to vector<1x128xf32>
    %8 = vector.extract_strided_slice %4 {offsets = [0, 0], sizes = [1, 128], strides = [1, 1]} : vector<4x128xf32> to vector<1x128xf32>
    %9 = vector.extract_strided_slice %2 {offsets = [1, 0], sizes = [1, 128], strides = [1, 1]} : vector<4x128xf32> to vector<1x128xf32>
    %10 = arith.subf %6, %9 : vector<1x128xf32>
    %11 = vector.extract_strided_slice %3 {offsets = [1, 0], sizes = [1, 128], strides = [1, 1]} : vector<4x128xf32> to vector<1x128xf32>
    %12 = arith.subf %7, %11 : vector<1x128xf32>
    %13 = vector.extract_strided_slice %4 {offsets = [1, 0], sizes = [1, 128], strides = [1, 1]} : vector<4x128xf32> to vector<1x128xf32>
    %14 = arith.subf %8, %13 : vector<1x128xf32>
    %15 = arith.mulf %10, %10 : vector<1x128xf32>
    %16 = arith.mulf %12, %12 : vector<1x128xf32>
    %17 = arith.addf %15, %16 : vector<1x128xf32>
    %18 = arith.mulf %14, %14 : vector<1x128xf32>
    %19 = arith.addf %17, %18 : vector<1x128xf32>
    %20 = math.sqrt %19 : vector<1x128xf32>
    %21 = vector.broadcast %0 : f32 to vector<1x128xf32>
    %22 = arith.mulf %21, %20 : vector<1x128xf32>
    %cst_6 = arith.constant 1.000000e+00 : f32
    %23 = vector.broadcast %cst_6 : f32 to vector<1x128xf32>
    %24 = arith.addf %23, %22 : vector<1x128xf32>
    %25 = tpu.reciprocal %24 : vector<1x128xf32> -> vector<1x128xf32>
    %26 = arith.mulf %20, %25 : vector<1x128xf32>
    %cst_7 = arith.constant 2.500000e-01 : f32
    %27 = vector.broadcast %cst_7 : f32 to vector<1x128xf32>
    %28 = arith.mulf %27, %26 : vector<1x128xf32>
    %29 = arith.addf %5, %28 : vector<1x128xf32>
    %30 = vector.extract_strided_slice %2 {offsets = [2, 0], sizes = [1, 128], strides = [1, 1]} : vector<4x128xf32> to vector<1x128xf32>
    %31 = arith.subf %6, %30 : vector<1x128xf32>
    %32 = vector.extract_strided_slice %3 {offsets = [2, 0], sizes = [1, 128], strides = [1, 1]} : vector<4x128xf32> to vector<1x128xf32>
    %33 = arith.subf %7, %32 : vector<1x128xf32>
    %34 = vector.extract_strided_slice %4 {offsets = [2, 0], sizes = [1, 128], strides = [1, 1]} : vector<4x128xf32> to vector<1x128xf32>
    %35 = arith.subf %8, %34 : vector<1x128xf32>
    %36 = arith.mulf %31, %31 : vector<1x128xf32>
    %37 = arith.mulf %33, %33 : vector<1x128xf32>
    %38 = arith.addf %36, %37 : vector<1x128xf32>
    %39 = arith.mulf %35, %35 : vector<1x128xf32>
    %40 = arith.addf %38, %39 : vector<1x128xf32>
    %41 = math.sqrt %40 : vector<1x128xf32>
    %42 = vector.broadcast %0 : f32 to vector<1x128xf32>
    %43 = arith.mulf %42, %41 : vector<1x128xf32>
    %cst_8 = arith.constant 1.000000e+00 : f32
    %44 = vector.broadcast %cst_8 : f32 to vector<1x128xf32>
    %45 = arith.addf %44, %43 : vector<1x128xf32>
    %46 = tpu.reciprocal %45 : vector<1x128xf32> -> vector<1x128xf32>
    %47 = arith.mulf %41, %46 : vector<1x128xf32>
    %cst_9 = arith.constant 5.000000e-01 : f32
    %48 = vector.broadcast %cst_9 : f32 to vector<1x128xf32>
    %49 = arith.mulf %48, %47 : vector<1x128xf32>
    %50 = arith.addf %29, %49 : vector<1x128xf32>
    %51 = vector.extract_strided_slice %2 {offsets = [3, 0], sizes = [1, 128], strides = [1, 1]} : vector<4x128xf32> to vector<1x128xf32>
    %52 = arith.subf %6, %51 : vector<1x128xf32>
    %53 = vector.extract_strided_slice %3 {offsets = [3, 0], sizes = [1, 128], strides = [1, 1]} : vector<4x128xf32> to vector<1x128xf32>
    %54 = arith.subf %7, %53 : vector<1x128xf32>
    %55 = vector.extract_strided_slice %4 {offsets = [3, 0], sizes = [1, 128], strides = [1, 1]} : vector<4x128xf32> to vector<1x128xf32>
    %56 = arith.subf %8, %55 : vector<1x128xf32>
    %57 = arith.mulf %52, %52 : vector<1x128xf32>
    %58 = arith.mulf %54, %54 : vector<1x128xf32>
    %59 = arith.addf %57, %58 : vector<1x128xf32>
    %60 = arith.mulf %56, %56 : vector<1x128xf32>
    %61 = arith.addf %59, %60 : vector<1x128xf32>
    %62 = math.sqrt %61 : vector<1x128xf32>
    %63 = vector.broadcast %0 : f32 to vector<1x128xf32>
    %64 = arith.mulf %63, %62 : vector<1x128xf32>
    %cst_10 = arith.constant 1.000000e+00 : f32
    %65 = vector.broadcast %cst_10 : f32 to vector<1x128xf32>
    %66 = arith.addf %65, %64 : vector<1x128xf32>
    %67 = tpu.reciprocal %66 : vector<1x128xf32> -> vector<1x128xf32>
    %68 = arith.mulf %62, %67 : vector<1x128xf32>
    %cst_11 = arith.constant 5.000000e-01 : f32
    %69 = vector.broadcast %cst_11 : f32 to vector<1x128xf32>
    %70 = arith.mulf %69, %68 : vector<1x128xf32>
    %71 = arith.addf %50, %70 : vector<1x128xf32>
    %c0_12 = arith.constant 0 : index
    %72 = memref.load %arg2[%c0_12] : memref<6xf32, #tpu.memory_space<smem>>
    %c1_13 = arith.constant 1 : index
    %73 = memref.load %arg2[%c1_13] : memref<6xf32, #tpu.memory_space<smem>>
    %c2 = arith.constant 2 : index
    %74 = memref.load %arg2[%c2] : memref<6xf32, #tpu.memory_space<smem>>
    %75 = vector.broadcast %72 : f32 to vector<1x128xf32>
    %76 = arith.subf %6, %75 : vector<1x128xf32>
    %77 = vector.broadcast %73 : f32 to vector<1x128xf32>
    %78 = arith.subf %7, %77 : vector<1x128xf32>
    %79 = vector.broadcast %74 : f32 to vector<1x128xf32>
    %80 = arith.subf %8, %79 : vector<1x128xf32>
    %81 = arith.mulf %76, %76 : vector<1x128xf32>
    %82 = arith.mulf %78, %78 : vector<1x128xf32>
    %83 = arith.addf %81, %82 : vector<1x128xf32>
    %84 = arith.mulf %80, %80 : vector<1x128xf32>
    %85 = arith.addf %83, %84 : vector<1x128xf32>
    %86 = math.sqrt %85 : vector<1x128xf32>
    %87 = vector.broadcast %1 : f32 to vector<1x128xf32>
    %88 = arith.mulf %87, %86 : vector<1x128xf32>
    %cst_14 = arith.constant 1.000000e+00 : f32
    %89 = vector.broadcast %cst_14 : f32 to vector<1x128xf32>
    %90 = arith.addf %89, %88 : vector<1x128xf32>
    %91 = tpu.reciprocal %90 : vector<1x128xf32> -> vector<1x128xf32>
    %92 = arith.mulf %86, %91 : vector<1x128xf32>
    %93 = arith.subf %71, %92 : vector<1x128xf32>
    %c3 = arith.constant 3 : index
    %94 = memref.load %arg2[%c3] : memref<6xf32, #tpu.memory_space<smem>>
    %c4 = arith.constant 4 : index
    %95 = memref.load %arg2[%c4] : memref<6xf32, #tpu.memory_space<smem>>
    %c5 = arith.constant 5 : index
    %96 = memref.load %arg2[%c5] : memref<6xf32, #tpu.memory_space<smem>>
    %97 = vector.broadcast %94 : f32 to vector<1x128xf32>
    %98 = arith.subf %6, %97 : vector<1x128xf32>
    %99 = vector.broadcast %95 : f32 to vector<1x128xf32>
    %100 = arith.subf %7, %99 : vector<1x128xf32>
    %101 = vector.broadcast %96 : f32 to vector<1x128xf32>
    %102 = arith.subf %8, %101 : vector<1x128xf32>
    %103 = arith.mulf %98, %98 : vector<1x128xf32>
    %104 = arith.mulf %100, %100 : vector<1x128xf32>
    %105 = arith.addf %103, %104 : vector<1x128xf32>
    %106 = arith.mulf %102, %102 : vector<1x128xf32>
    %107 = arith.addf %105, %106 : vector<1x128xf32>
    %108 = math.sqrt %107 : vector<1x128xf32>
    %109 = vector.broadcast %1 : f32 to vector<1x128xf32>
    %110 = arith.mulf %109, %108 : vector<1x128xf32>
    %cst_15 = arith.constant 1.000000e+00 : f32
    %111 = vector.broadcast %cst_15 : f32 to vector<1x128xf32>
    %112 = arith.addf %111, %110 : vector<1x128xf32>
    %113 = tpu.reciprocal %112 : vector<1x128xf32> -> vector<1x128xf32>
    %114 = arith.mulf %108, %113 : vector<1x128xf32>
    %115 = arith.subf %93, %114 : vector<1x128xf32>
    %116 = vector.extract_strided_slice %2 {offsets = [1, 0], sizes = [1, 128], strides = [1, 1]} : vector<4x128xf32> to vector<1x128xf32>
    %117 = vector.extract_strided_slice %3 {offsets = [1, 0], sizes = [1, 128], strides = [1, 1]} : vector<4x128xf32> to vector<1x128xf32>
    %118 = vector.extract_strided_slice %4 {offsets = [1, 0], sizes = [1, 128], strides = [1, 1]} : vector<4x128xf32> to vector<1x128xf32>
    %119 = vector.extract_strided_slice %2 {offsets = [2, 0], sizes = [1, 128], strides = [1, 1]} : vector<4x128xf32> to vector<1x128xf32>
    %120 = arith.subf %116, %119 : vector<1x128xf32>
    %121 = vector.extract_strided_slice %3 {offsets = [2, 0], sizes = [1, 128], strides = [1, 1]} : vector<4x128xf32> to vector<1x128xf32>
    %122 = arith.subf %117, %121 : vector<1x128xf32>
    %123 = vector.extract_strided_slice %4 {offsets = [2, 0], sizes = [1, 128], strides = [1, 1]} : vector<4x128xf32> to vector<1x128xf32>
    %124 = arith.subf %118, %123 : vector<1x128xf32>
    %125 = arith.mulf %120, %120 : vector<1x128xf32>
    %126 = arith.mulf %122, %122 : vector<1x128xf32>
    %127 = arith.addf %125, %126 : vector<1x128xf32>
    %128 = arith.mulf %124, %124 : vector<1x128xf32>
    %129 = arith.addf %127, %128 : vector<1x128xf32>
    %130 = math.sqrt %129 : vector<1x128xf32>
    %131 = vector.broadcast %0 : f32 to vector<1x128xf32>
    %132 = arith.mulf %131, %130 : vector<1x128xf32>
    %cst_16 = arith.constant 1.000000e+00 : f32
    %133 = vector.broadcast %cst_16 : f32 to vector<1x128xf32>
    %134 = arith.addf %133, %132 : vector<1x128xf32>
    %135 = tpu.reciprocal %134 : vector<1x128xf32> -> vector<1x128xf32>
    %136 = arith.mulf %130, %135 : vector<1x128xf32>
    %cst_17 = arith.constant 5.000000e-01 : f32
    %137 = vector.broadcast %cst_17 : f32 to vector<1x128xf32>
    %138 = arith.mulf %137, %136 : vector<1x128xf32>
    %139 = arith.addf %115, %138 : vector<1x128xf32>
    %140 = vector.extract_strided_slice %2 {offsets = [3, 0], sizes = [1, 128], strides = [1, 1]} : vector<4x128xf32> to vector<1x128xf32>
    %141 = arith.subf %116, %140 : vector<1x128xf32>
    %142 = vector.extract_strided_slice %3 {offsets = [3, 0], sizes = [1, 128], strides = [1, 1]} : vector<4x128xf32> to vector<1x128xf32>
    %143 = arith.subf %117, %142 : vector<1x128xf32>
    %144 = vector.extract_strided_slice %4 {offsets = [3, 0], sizes = [1, 128], strides = [1, 1]} : vector<4x128xf32> to vector<1x128xf32>
    %145 = arith.subf %118, %144 : vector<1x128xf32>
    %146 = arith.mulf %141, %141 : vector<1x128xf32>
    %147 = arith.mulf %143, %143 : vector<1x128xf32>
    %148 = arith.addf %146, %147 : vector<1x128xf32>
    %149 = arith.mulf %145, %145 : vector<1x128xf32>
    %150 = arith.addf %148, %149 : vector<1x128xf32>
    %151 = math.sqrt %150 : vector<1x128xf32>
    %152 = vector.broadcast %0 : f32 to vector<1x128xf32>
    %153 = arith.mulf %152, %151 : vector<1x128xf32>
    %cst_18 = arith.constant 1.000000e+00 : f32
    %154 = vector.broadcast %cst_18 : f32 to vector<1x128xf32>
    %155 = arith.addf %154, %153 : vector<1x128xf32>
    %156 = tpu.reciprocal %155 : vector<1x128xf32> -> vector<1x128xf32>
    %157 = arith.mulf %151, %156 : vector<1x128xf32>
    %cst_19 = arith.constant 5.000000e-01 : f32
    %158 = vector.broadcast %cst_19 : f32 to vector<1x128xf32>
    %159 = arith.mulf %158, %157 : vector<1x128xf32>
    %160 = arith.addf %139, %159 : vector<1x128xf32>
    %c0_20 = arith.constant 0 : index
    %161 = memref.load %arg2[%c0_20] : memref<6xf32, #tpu.memory_space<smem>>
    %c1_21 = arith.constant 1 : index
    %162 = memref.load %arg2[%c1_21] : memref<6xf32, #tpu.memory_space<smem>>
    %c2_22 = arith.constant 2 : index
    %163 = memref.load %arg2[%c2_22] : memref<6xf32, #tpu.memory_space<smem>>
    %164 = vector.broadcast %161 : f32 to vector<1x128xf32>
    %165 = arith.subf %116, %164 : vector<1x128xf32>
    %166 = vector.broadcast %162 : f32 to vector<1x128xf32>
    %167 = arith.subf %117, %166 : vector<1x128xf32>
    %168 = vector.broadcast %163 : f32 to vector<1x128xf32>
    %169 = arith.subf %118, %168 : vector<1x128xf32>
    %170 = arith.mulf %165, %165 : vector<1x128xf32>
    %171 = arith.mulf %167, %167 : vector<1x128xf32>
    %172 = arith.addf %170, %171 : vector<1x128xf32>
    %173 = arith.mulf %169, %169 : vector<1x128xf32>
    %174 = arith.addf %172, %173 : vector<1x128xf32>
    %175 = math.sqrt %174 : vector<1x128xf32>
    %176 = vector.broadcast %1 : f32 to vector<1x128xf32>
    %177 = arith.mulf %176, %175 : vector<1x128xf32>
    %cst_23 = arith.constant 1.000000e+00 : f32
    %178 = vector.broadcast %cst_23 : f32 to vector<1x128xf32>
    %179 = arith.addf %178, %177 : vector<1x128xf32>
    %180 = tpu.reciprocal %179 : vector<1x128xf32> -> vector<1x128xf32>
    %181 = arith.mulf %175, %180 : vector<1x128xf32>
    %182 = arith.subf %160, %181 : vector<1x128xf32>
    %c3_24 = arith.constant 3 : index
    %183 = memref.load %arg2[%c3_24] : memref<6xf32, #tpu.memory_space<smem>>
    %c4_25 = arith.constant 4 : index
    %184 = memref.load %arg2[%c4_25] : memref<6xf32, #tpu.memory_space<smem>>
    %c5_26 = arith.constant 5 : index
    %185 = memref.load %arg2[%c5_26] : memref<6xf32, #tpu.memory_space<smem>>
    %186 = vector.broadcast %183 : f32 to vector<1x128xf32>
    %187 = arith.subf %116, %186 : vector<1x128xf32>
    %188 = vector.broadcast %184 : f32 to vector<1x128xf32>
    %189 = arith.subf %117, %188 : vector<1x128xf32>
    %190 = vector.broadcast %185 : f32 to vector<1x128xf32>
    %191 = arith.subf %118, %190 : vector<1x128xf32>
    %192 = arith.mulf %187, %187 : vector<1x128xf32>
    %193 = arith.mulf %189, %189 : vector<1x128xf32>
    %194 = arith.addf %192, %193 : vector<1x128xf32>
    %195 = arith.mulf %191, %191 : vector<1x128xf32>
    %196 = arith.addf %194, %195 : vector<1x128xf32>
    %197 = math.sqrt %196 : vector<1x128xf32>
    %198 = vector.broadcast %1 : f32 to vector<1x128xf32>
    %199 = arith.mulf %198, %197 : vector<1x128xf32>
    %cst_27 = arith.constant 1.000000e+00 : f32
    %200 = vector.broadcast %cst_27 : f32 to vector<1x128xf32>
    %201 = arith.addf %200, %199 : vector<1x128xf32>
    %202 = tpu.reciprocal %201 : vector<1x128xf32> -> vector<1x128xf32>
    %203 = arith.mulf %197, %202 : vector<1x128xf32>
    %204 = arith.subf %182, %203 : vector<1x128xf32>
    %205 = vector.extract_strided_slice %2 {offsets = [2, 0], sizes = [1, 128], strides = [1, 1]} : vector<4x128xf32> to vector<1x128xf32>
    %206 = vector.extract_strided_slice %3 {offsets = [2, 0], sizes = [1, 128], strides = [1, 1]} : vector<4x128xf32> to vector<1x128xf32>
    %207 = vector.extract_strided_slice %4 {offsets = [2, 0], sizes = [1, 128], strides = [1, 1]} : vector<4x128xf32> to vector<1x128xf32>
    %208 = vector.extract_strided_slice %2 {offsets = [3, 0], sizes = [1, 128], strides = [1, 1]} : vector<4x128xf32> to vector<1x128xf32>
    %209 = arith.subf %205, %208 : vector<1x128xf32>
    %210 = vector.extract_strided_slice %3 {offsets = [3, 0], sizes = [1, 128], strides = [1, 1]} : vector<4x128xf32> to vector<1x128xf32>
    %211 = arith.subf %206, %210 : vector<1x128xf32>
    %212 = vector.extract_strided_slice %4 {offsets = [3, 0], sizes = [1, 128], strides = [1, 1]} : vector<4x128xf32> to vector<1x128xf32>
    %213 = arith.subf %207, %212 : vector<1x128xf32>
    %214 = arith.mulf %209, %209 : vector<1x128xf32>
    %215 = arith.mulf %211, %211 : vector<1x128xf32>
    %216 = arith.addf %214, %215 : vector<1x128xf32>
    %217 = arith.mulf %213, %213 : vector<1x128xf32>
    %218 = arith.addf %216, %217 : vector<1x128xf32>
    %219 = math.sqrt %218 : vector<1x128xf32>
    %220 = vector.broadcast %0 : f32 to vector<1x128xf32>
    %221 = arith.mulf %220, %219 : vector<1x128xf32>
    %cst_28 = arith.constant 1.000000e+00 : f32
    %222 = vector.broadcast %cst_28 : f32 to vector<1x128xf32>
    %223 = arith.addf %222, %221 : vector<1x128xf32>
    %224 = tpu.reciprocal %223 : vector<1x128xf32> -> vector<1x128xf32>
    %225 = arith.mulf %219, %224 : vector<1x128xf32>
    %cst_29 = arith.constant 2.500000e-01 : f32
    %226 = vector.broadcast %cst_29 : f32 to vector<1x128xf32>
    %227 = arith.mulf %226, %225 : vector<1x128xf32>
    %228 = arith.addf %204, %227 : vector<1x128xf32>
    %c0_30 = arith.constant 0 : index
    %229 = memref.load %arg2[%c0_30] : memref<6xf32, #tpu.memory_space<smem>>
    %c1_31 = arith.constant 1 : index
    %230 = memref.load %arg2[%c1_31] : memref<6xf32, #tpu.memory_space<smem>>
    %c2_32 = arith.constant 2 : index
    %231 = memref.load %arg2[%c2_32] : memref<6xf32, #tpu.memory_space<smem>>
    %232 = vector.broadcast %229 : f32 to vector<1x128xf32>
    %233 = arith.subf %205, %232 : vector<1x128xf32>
    %234 = vector.broadcast %230 : f32 to vector<1x128xf32>
    %235 = arith.subf %206, %234 : vector<1x128xf32>
    %236 = vector.broadcast %231 : f32 to vector<1x128xf32>
    %237 = arith.subf %207, %236 : vector<1x128xf32>
    %238 = arith.mulf %233, %233 : vector<1x128xf32>
    %239 = arith.mulf %235, %235 : vector<1x128xf32>
    %240 = arith.addf %238, %239 : vector<1x128xf32>
    %241 = arith.mulf %237, %237 : vector<1x128xf32>
    %242 = arith.addf %240, %241 : vector<1x128xf32>
    %243 = math.sqrt %242 : vector<1x128xf32>
    %244 = vector.broadcast %1 : f32 to vector<1x128xf32>
    %245 = arith.mulf %244, %243 : vector<1x128xf32>
    %cst_33 = arith.constant 1.000000e+00 : f32
    %246 = vector.broadcast %cst_33 : f32 to vector<1x128xf32>
    %247 = arith.addf %246, %245 : vector<1x128xf32>
    %248 = tpu.reciprocal %247 : vector<1x128xf32> -> vector<1x128xf32>
    %249 = arith.mulf %243, %248 : vector<1x128xf32>
    %250 = arith.subf %228, %249 : vector<1x128xf32>
    %c3_34 = arith.constant 3 : index
    %251 = memref.load %arg2[%c3_34] : memref<6xf32, #tpu.memory_space<smem>>
    %c4_35 = arith.constant 4 : index
    %252 = memref.load %arg2[%c4_35] : memref<6xf32, #tpu.memory_space<smem>>
    %c5_36 = arith.constant 5 : index
    %253 = memref.load %arg2[%c5_36] : memref<6xf32, #tpu.memory_space<smem>>
    %254 = vector.broadcast %251 : f32 to vector<1x128xf32>
    %255 = arith.subf %205, %254 : vector<1x128xf32>
    %256 = vector.broadcast %252 : f32 to vector<1x128xf32>
    %257 = arith.subf %206, %256 : vector<1x128xf32>
    %258 = vector.broadcast %253 : f32 to vector<1x128xf32>
    %259 = arith.subf %207, %258 : vector<1x128xf32>
    %260 = arith.mulf %255, %255 : vector<1x128xf32>
    %261 = arith.mulf %257, %257 : vector<1x128xf32>
    %262 = arith.addf %260, %261 : vector<1x128xf32>
    %263 = arith.mulf %259, %259 : vector<1x128xf32>
    %264 = arith.addf %262, %263 : vector<1x128xf32>
    %265 = math.sqrt %264 : vector<1x128xf32>
    %266 = vector.broadcast %1 : f32 to vector<1x128xf32>
    %267 = arith.mulf %266, %265 : vector<1x128xf32>
    %cst_37 = arith.constant 1.000000e+00 : f32
    %268 = vector.broadcast %cst_37 : f32 to vector<1x128xf32>
    %269 = arith.addf %268, %267 : vector<1x128xf32>
    %270 = tpu.reciprocal %269 : vector<1x128xf32> -> vector<1x128xf32>
    %271 = arith.mulf %265, %270 : vector<1x128xf32>
    %272 = arith.subf %250, %271 : vector<1x128xf32>
    %273 = vector.extract_strided_slice %2 {offsets = [3, 0], sizes = [1, 128], strides = [1, 1]} : vector<4x128xf32> to vector<1x128xf32>
    %274 = vector.extract_strided_slice %3 {offsets = [3, 0], sizes = [1, 128], strides = [1, 1]} : vector<4x128xf32> to vector<1x128xf32>
    %275 = vector.extract_strided_slice %4 {offsets = [3, 0], sizes = [1, 128], strides = [1, 1]} : vector<4x128xf32> to vector<1x128xf32>
    %c0_38 = arith.constant 0 : index
    %276 = memref.load %arg2[%c0_38] : memref<6xf32, #tpu.memory_space<smem>>
    %c1_39 = arith.constant 1 : index
    %277 = memref.load %arg2[%c1_39] : memref<6xf32, #tpu.memory_space<smem>>
    %c2_40 = arith.constant 2 : index
    %278 = memref.load %arg2[%c2_40] : memref<6xf32, #tpu.memory_space<smem>>
    %279 = vector.broadcast %276 : f32 to vector<1x128xf32>
    %280 = arith.subf %273, %279 : vector<1x128xf32>
    %281 = vector.broadcast %277 : f32 to vector<1x128xf32>
    %282 = arith.subf %274, %281 : vector<1x128xf32>
    %283 = vector.broadcast %278 : f32 to vector<1x128xf32>
    %284 = arith.subf %275, %283 : vector<1x128xf32>
    %285 = arith.mulf %280, %280 : vector<1x128xf32>
    %286 = arith.mulf %282, %282 : vector<1x128xf32>
    %287 = arith.addf %285, %286 : vector<1x128xf32>
    %288 = arith.mulf %284, %284 : vector<1x128xf32>
    %289 = arith.addf %287, %288 : vector<1x128xf32>
    %290 = math.sqrt %289 : vector<1x128xf32>
    %291 = vector.broadcast %1 : f32 to vector<1x128xf32>
    %292 = arith.mulf %291, %290 : vector<1x128xf32>
    %cst_41 = arith.constant 1.000000e+00 : f32
    %293 = vector.broadcast %cst_41 : f32 to vector<1x128xf32>
    %294 = arith.addf %293, %292 : vector<1x128xf32>
    %295 = tpu.reciprocal %294 : vector<1x128xf32> -> vector<1x128xf32>
    %296 = arith.mulf %290, %295 : vector<1x128xf32>
    %297 = arith.subf %272, %296 : vector<1x128xf32>
    %c3_42 = arith.constant 3 : index
    %298 = memref.load %arg2[%c3_42] : memref<6xf32, #tpu.memory_space<smem>>
    %c4_43 = arith.constant 4 : index
    %299 = memref.load %arg2[%c4_43] : memref<6xf32, #tpu.memory_space<smem>>
    %c5_44 = arith.constant 5 : index
    %300 = memref.load %arg2[%c5_44] : memref<6xf32, #tpu.memory_space<smem>>
    %301 = vector.broadcast %298 : f32 to vector<1x128xf32>
    %302 = arith.subf %273, %301 : vector<1x128xf32>
    %303 = vector.broadcast %299 : f32 to vector<1x128xf32>
    %304 = arith.subf %274, %303 : vector<1x128xf32>
    %305 = vector.broadcast %300 : f32 to vector<1x128xf32>
    %306 = arith.subf %275, %305 : vector<1x128xf32>
    %307 = arith.mulf %302, %302 : vector<1x128xf32>
    %308 = arith.mulf %304, %304 : vector<1x128xf32>
    %309 = arith.addf %307, %308 : vector<1x128xf32>
    %310 = arith.mulf %306, %306 : vector<1x128xf32>
    %311 = arith.addf %309, %310 : vector<1x128xf32>
    %312 = math.sqrt %311 : vector<1x128xf32>
    %313 = vector.broadcast %1 : f32 to vector<1x128xf32>
    %314 = arith.mulf %313, %312 : vector<1x128xf32>
    %cst_45 = arith.constant 1.000000e+00 : f32
    %315 = vector.broadcast %cst_45 : f32 to vector<1x128xf32>
    %316 = arith.addf %315, %314 : vector<1x128xf32>
    %317 = tpu.reciprocal %316 : vector<1x128xf32> -> vector<1x128xf32>
    %318 = arith.mulf %312, %317 : vector<1x128xf32>
    %319 = arith.subf %297, %318 : vector<1x128xf32>
    %320 = math.exp %319 : vector<1x128xf32>
    %c0_46 = arith.constant 0 : index
    %c0_47 = arith.constant 0 : index
    %321 = vector.load %arg6[%c0_46, %c0_47] : memref<1x128xf32, #tpu.memory_space<vmem>>, vector<1x128xf32>
    tpu.vector_store %arg6[%c0_46, %c0_47], %320 {strides = array<i32>} : memref<1x128xf32, #tpu.memory_space<vmem>>, vector<1x128xf32>,
    return
  }
  func.func @transform_0(%arg0: i32) -> i32 {
    %c0_i32 = arith.constant 0 : i32
    %c0_i32_0 = arith.constant 0 : i32
    return %c0_i32 : i32
  }
  func.func @transform_1(%arg0: i32) -> i32 {
    %c0_i32 = arith.constant 0 : i32
    %c0_i32_0 = arith.constant 0 : i32
    return %c0_i32 : i32
  }
  func.func @transform_2(%arg0: i32) -> (i32, i32) {
    %c0_i32 = arith.constant 0 : i32
    %c0_i32_0 = arith.constant 0 : i32
    return %c0_i32, %arg0 : i32, i32
  }
  func.func @transform_3(%arg0: i32) -> (i32, i32) {
    %c0_i32 = arith.constant 0 : i32
    %c0_i32_0 = arith.constant 0 : i32
    return %c0_i32, %arg0 : i32, i32
  }
  func.func @transform_4(%arg0: i32) -> (i32, i32) {
    %c0_i32 = arith.constant 0 : i32
    %c0_i32_0 = arith.constant 0 : i32
    return %c0_i32, %arg0 : i32, i32
  }
  func.func @transform_5(%arg0: i32) -> (i32, i32) {
    %c0_i32 = arith.constant 0 : i32
    %c0_i32_0 = arith.constant 0 : i32
    return %c0_i32, %arg0 : i32, i32
  }
}

</mosaic_0001>

<bundles_post_ra>
// kernel: tpu_custom_call.1
= control target key start
LH: loop header
LB: loop body
LE: loop exit
PB: predicated region body
PF: predicated region fallthrough
CT: control target
= control target key end

     0   :  { %s1270_s0 = inlined_call_operand.hbm [shape: f32[2], index: 0, kind: input, shape index: {}]   ;;  %s1271_s1 = inlined_call_operand.vmem [shape: f32[6], index: 1, kind: input, shape index: {}]   ;;  %s1272_s2 = inlined_call_operand.hbm [shape: f32[4,256], index: 2, kind: input, shape index: {}]   ;;  %s1273_s3 = inlined_call_operand.hbm [shape: f32[4,256], index: 3, kind: input, shape index: {}]   ;;  %s1274_s4 = inlined_call_operand.hbm [shape: f32[4,256], index: 4, kind: input, shape index: {}]   ;;  %s1275_s5 = inlined_call_operand.hbm [shape: f32[1,256], index: 5, kind: output, shape index: {}]  }
   0x1   :  { %1286 = sst [smem:[#allocation22_spill]] %s1271_s1 }
   0x2   :  { %1287 = sst [smem:[#allocation23_spill]] %s1273_s3 }
   0x3   :  { %10 = vsyncpa [#allocation5], 0 }
   0x4   :  { %11 = vsyncpa [#allocation6], 0 }
   0x5   :  { %12 = vsyncpa [#allocation3], 0 }
   0x6   :  { %14 = vsyncpa [#allocation3 + $0x1], 0 }
   0x7   :  { %15 = vsyncpa [#allocation10], 0 }
   0x8   :  { %17 = vsyncpa [#allocation10 + $0x1], 0 }
   0x9   :  { %18 = vsyncpa [#allocation4], 0 }
   0xa   :  { %20 = vsyncpa [#allocation4 + $0x1], 0  ;;  %s1009_s18 = smov 0   ;;  %s1011_s19 = smov 0  }
   0xb   :  { %s1013_s20 = smov 0   ;;  %s1015_s21 = smov 0  }
   0xc LB: > { %1288 = sst [smem:[#allocation18_spill]] %s967_s20  ;;  %s1030_s22 = sadd.s32 1, %s971_s21   ;;  %s971_s21 = sphi %s1015_s21, %s1313_s21   ;;  %s967_s20 = sphi %s1013_s20, %s1315_s20   ;;  %s963_s19 = sphi %s1011_s19, %s1317_s19   ;;  %s959_s18 = sphi %s1009_s18, %s1316_s18  }
   0xd   : > { %1289 = sst [smem:[#allocation19_spill]] %s971_s21  ;;  %s75_s23 = sadd.s32 1, %s967_s20 }
   0xe   : > { %1290 = sst [smem:[#allocation20_spill]] %s1030_s22  ;;  %s72_s24 = ssub.s32 %s971_s21, %s1030_s22 }
   0xf   : > { %p1276_p0 = scmp.ne.s32.totalorder %s967_s20, %s963_s19  ;;  %p73_p1 = scmp.eq.s32.totalorder %s72_s24, 0 }
  0x10   : > { %p83_p2 = scmp.eq.s32.totalorder %s971_s21, 0  ;;  %p725_p4 = scmp.lt.s32.totalorder %s971_s21, 2 }
  0x11   : > { %s1041_s25 = scalar_select %p73_p1, %s967_s20, %s75_s23  }
  0x12   : > { %p84_p5 = por %p83_p2, %p1276_p0  ;;  %s210_s26 = sand.u32 1, %s967_s20  }
  0x13   : > { %1291 = sst [smem:[#allocation21_spill]] %s1041_s25  ;;  %s1049_s27 = sshll.u32 %s210_s26, 2 }
  0x14   : > { %s1052_s28 = sshll.u32 %s971_s21, 6  ;;  %p1054_p6 = pnand %p725_p4, %p84_p5 }
  0x15   : > { %s228_s30 = sand.u32 1, %s971_s21   ;;  %s1293_s3 = sld [smem:[#allocation23_spill]] }
  0x16   : > { %s232_s9 = scalar_lea.vmem [#allocation9], %s1049_s27  ;;  %s1066_s11 = scalar_lea.sflag [#allocation10], %s228_s30 }
  0x17   : > { %s239_s10 = sshll.u32 %s232_s9, 4  ;;  %p1072_p8 = pneg %p1054_p6  ;;  %s240_s10 = int_to_ptr.vmem [resolvable:$true] %s239_s10 }
  0x1b   : > { %s1063_s8 = scalar_lea.hbm %s1293_s3, %s1052_s28  ;;  %s790_s16 = scalar_lea.hbm %s1293_s3, 128 }
  0x1c   : > { %s785_s12 = scalar_lea.hbm %s1063_s8, 64  ;;  %p791_p11 = scmp.lt.s32.totalorder %s1063_s8, %s1293_s3 }
  0x1d   : > { %p786_p7 = scmp.ne.s32.totalorder %s1063_s8, %s785_s12  ;;  %p792_p12 = scmp.lt.s32.totalorder %s790_s16, %s785_s12 }
  0x1f   : > { %p788_p9 = pnand %p1072_p8, %p786_p7  ;;  %p793_p13 = por %p792_p12, %p791_p11 }
  0x21   : > { %p789_p10 = pneg %p788_p9 }
  0x23   : > { %p794_p1 = pnand %p793_p13, %p789_p10 }
  0x25   : > { %797 = shalt.err (!%p794_p1)
}
  0x26   : > { %s798_s24 = scalar_lea.vmem %s240_s10, 64  ;;  %s973_s30 = smov [#allocation9]  }
  0x27   : > { %p799_p2 = scmp.ne.s32.totalorder %s240_s10, %s798_s24  ;;  %s803_s6 = sshll.u32 %s973_s30, 4  ;;  %s804_s6 = int_to_ptr.vmem [resolvable:$false] %s803_s6 }
  0x28   : > { %s805_s7 = scalar_lea.vmem %s804_s6, 128  ;;  %p806_p7 = scmp.lt.s32.totalorder %s240_s10, %s804_s6 }
  0x29   : > { %p801_p4 = pnand %p799_p2, %p1072_p8  ;;  %p807_p9 = scmp.lt.s32.totalorder %s805_s7, %s798_s24 }
  0x2b   : > { %p802_p5 = pneg %p801_p4  ;;  %p808_p3 = por %p807_p9, %p806_p7 }
  0x2d   : > { %p809_p0 = pnand %p808_p3, %p802_p5 }
  0x2f   : > { %812 = shalt.err (!%p809_p0)
}
  0x30   : > { %715 = dma.hbm_to_vmem [thread:$0]  (!%p1054_p6), %s1063_s8, 64, %s240_s10, %s1066_s11  }
  0x31   : > { %s1092_s9 = sadd.s32 4294967295, %s971_s21   ;;  %s660_s12 = sadd.s32 4294967294, %s971_s21  }
  0x32   : > { %p88_p0 = scmp.ne.s32.totalorder %s963_s19, %s959_s18  ;;  %p1279_p3 = scmp.eq.s32.totalorder %s1092_s9, 0 }
  0x33   : > { %p164_p10 = scmp.eq.s32.totalorder %s1092_s9, 1  ;;  %p170_p11 = scmp.eq.s32.totalorder %s660_s12, 1 }
  0x34   : > { %p1101_p12 = por %p1279_p3, %p88_p0  ;;  %p661_p13 = scmp.ge.s32.totalorder %s971_s21, 1 }
  0x35   : > { %p1296_p1 = scmp.ne.s32.totalorder %s967_s20, %s963_s19  ;;  %p1113_p4 = por %p170_p11, %p88_p0 }
  0x36   : > { %s1295_s14 = scalar_select %p1101_p12, 1, 0 }
  0x37   : > { %p1109_p2 = por %p164_p10, %p1296_p1  ;;  %p177_p5 = scmp.lt.s32.totalorder %s971_s21, 3 }
  0x38   : > { %s1298_s10 = scalar_select %p1113_p4, 1, 0 }
  0x39   : > { %s1297_s8 = scalar_select %p1109_p2, 1, 0 }
  0x3a   : > { %s1299_s1 = sld [smem:[#allocation22_spill]]  ;;  %p1121_p7 = pnand %p661_p13, %p177_p5 }
  0x3b   : > { %s1133_s6 = scalar_lea.hbm %s1272_s2, %s1052_s28  ;;  %s214_s7 = scalar_lea.vmem [#allocation8], %s1049_s27 }
  0x3c   : > { %s1300_s23 = scalar_select %p1121_p7, 1, 0 }
  0x3d   : > { %p702_p9 = pneg %p1121_p7  ;;  %s221_s12 = sshll.u32 %s214_s7, 4  ;;  %s222_s12 = int_to_ptr.vmem [resolvable:$true] %s221_s12 }
  0x3e   : > { %s211_s16 = scalar_lea.sflag [#allocation3], %s210_s26  ;;  %s818_s3 = scalar_lea.hbm %s1272_s2, 128 }
  0x3f   : > { %p1138_p0 = pnand %p702_p9, %p1279_p3  ;;  %p819_p1 = scmp.lt.s32.totalorder %s1133_s6, %s1272_s2 }
  0x40   : > { %s199_s17 = sshll.u32 %s1299_s1, 4  ;;  %s813_s1 = scalar_lea.hbm %s1133_s6, 64  ;;  %s1125_s17 = int_to_ptr.vmem [resolvable:$true] %s199_s17 }
  0x41   : > { %s1301_s15 = scalar_select %p1138_p0, 1, 0 }
  0x42   : > { %p814_p10 = scmp.ne.s32.totalorder %s1133_s6, %s813_s1  ;;  %p820_p5 = scmp.lt.s32.totalorder %s818_s3, %s813_s1 }
  0x44   : > { %p816_p11 = pnand %p814_p10, %p1072_p8  ;;  %p821_p9 = por %p820_p5, %p819_p1 }
  0x46   : > { %p817_p13 = pneg %p816_p11 }
  0x48   : > { %p822_p3 = pnand %p821_p9, %p817_p13 }
  0x4a   : > { %825 = shalt.err (!%p822_p3)
}
  0x4b   : > { %s826_s7 = scalar_lea.vmem %s222_s12, 64  ;;  %s974_s26 = smov [#allocation8]  }
  0x4c   : > { %p827_p4 = scmp.ne.s32.totalorder %s222_s12, %s826_s7  ;;  %s831_s20 = sshll.u32 %s974_s26, 4  ;;  %s832_s20 = int_to_ptr.vmem [resolvable:$false] %s831_s20 }
  0x4d   : > { %s833_s21 = scalar_lea.vmem %s832_s20, 128  ;;  %p834_p10 = scmp.lt.s32.totalorder %s222_s12, %s832_s20 }
  0x4e   : > { %p829_p2 = pnand %p827_p4, %p1072_p8  ;;  %p835_p11 = scmp.lt.s32.totalorder %s833_s21, %s826_s7 }
  0x50   : > { %p830_p12 = pneg %p829_p2  ;;  %p836_p7 = por %p835_p11, %p834_p10 }
  0x52   : > { %p837_p0 = pnand %p836_p7, %p830_p12 }
  0x54   : > { %840 = shalt.err (!%p837_p0)
}
  0x55   : > { %712 = dma.hbm_to_vmem [thread:$0]  (!%p1054_p6), %s1133_s6, 64, %s222_s12, %s211_s16  }
  0x56   : > { %s975_s1 = smov [#allocation2]   ;;  %p1302_p3 = scmp.ne.s32.totalorder %s1301_s15, 0 }
  0x57   : > { %s852_s20 = scalar_lea.vmem %s1125_s17, 16  ;;  %p860_p0 = scmp.lt.s32.totalorder %s1125_s17, %s1125_s17 }
  0x58   : > { %705 = dma.hbm_to_smem (!%p1302_p3), %s1270_s0, 16, %s975_s1, [#allocation5]  }
  0x59   : > { %p853_p2 = scmp.ne.s32.totalorder %s1125_s17, %s852_s20  ;;  %p854_p12 = pneg %p1302_p3 }
  0x5a   : > { %p861_p13 = scmp.lt.s32.totalorder %s852_s20, %s852_s20 }
  0x5b   : > { %p855_p4 = pnand %p854_p12, %p853_p2 }
  0x5c   : > { %p862_p1 = por %p861_p13, %p860_p0 }
  0x5d   : > { %p856_p7 = pneg %p855_p4 }
  0x5f   : > { %p863_p5 = pnand %p862_p1, %p856_p7 }
  0x61   : > { %866 = shalt.err (!%p863_p5)
}
  0x62   : > { %s976_s21 = smov [#allocation7]   ;;  %s255_s12 = scalar_lea.hbm %s1274_s4, %s1052_s28 }
  0x63   : > { %708 = dma.vmem_to_smem (!%p1302_p3), %s1125_s17, 16, %s976_s21, [#allocation6]  }
  0x64   : > { %s250_s16 = scalar_lea.vmem [#allocation11], %s1049_s27  ;;  %s867_s30 = scalar_lea.hbm %s255_s12, 64 }
  0x65   : > { %s257_s24 = sshll.u32 %s250_s16, 4  ;;  %p868_p9 = scmp.ne.s32.totalorder %s255_s12, %s867_s30  ;;  %s258_s24 = int_to_ptr.vmem [resolvable:$true] %s257_s24 }
  0x66   : > { %s872_s15 = scalar_lea.hbm %s1274_s4, 128  ;;  %p873_p3 = scmp.lt.s32.totalorder %s255_s12, %s1274_s4 }
  0x67   : > { %p870_p10 = pnand %p868_p9, %p1072_p8  ;;  %p874_p2 = scmp.lt.s32.totalorder %s872_s15, %s867_s30 }
  0x69   : > { %p871_p11 = pneg %p870_p10  ;;  %p875_p12 = por %p874_p2, %p873_p3 }
  0x6b   : > { %p876_p4 = pnand %p875_p12, %p871_p11 }
  0x6d   : > { %879 = shalt.err (!%p876_p4)
}
  0x6e   : > { %s880_s27 = scalar_lea.vmem %s258_s24, 64  ;;  %s977_s28 = smov [#allocation11]  }
  0x6f   : > { %p881_p7 = scmp.ne.s32.totalorder %s258_s24, %s880_s27  ;;  %s885_s17 = sshll.u32 %s977_s28, 4  ;;  %s886_s17 = int_to_ptr.vmem [resolvable:$false] %s885_s17 }
  0x70   : > { %s887_s22 = scalar_lea.vmem %s886_s17, 128  ;;  %p888_p1 = scmp.lt.s32.totalorder %s258_s24, %s886_s17 }
  0x71   : > { %p883_p0 = pnand %p881_p7, %p1072_p8  ;;  %p889_p5 = scmp.lt.s32.totalorder %s887_s22, %s880_s27 }
  0x73   : > { %p884_p13 = pneg %p883_p0  ;;  %p890_p9 = por %p889_p5, %p888_p1 }
  0x75   : > { %p891_p10 = pnand %p890_p9, %p884_p13 }
  0x77   : > { %894 = shalt.err (!%p891_p10)
}
  0x78   : > { %718 = dma.hbm_to_vmem [thread:$0]  (!%p1054_p6), %s255_s12, 64, %s258_s24, %s1066_s11  }
  0x79   : > { %p1303_p11 = scmp.ne.s32.totalorder %s1300_s23, 0 }
  0x7a   : > { %p1304_p3 = scmp.eq.s32.totalorder (!%p1303_p11), %s1092_s9, 0 }
  0x7b   : > { %266 = sbr.rel (%p1303_p11) target bundleno = 249 (0xf9), region = 40 }
  0x80   : > { %938 = dma.done.wait (%p1304_p3), [#allocation5], 16   ;;  %p1305_p8 = pmov %p1304_p3 }
  0x81   : > { %p1306_p2 = pmov %p1304_p3 }
  0x82   : > { %940 = vsyncadd (%p1305_p8), [#allocation5], 4294967280 }
  0x83   : > { %942 = dma.done.wait (%p1306_p2), [#allocation6], 16   ;;  %p1307_p12 = pmov %p1306_p2 }
  0x84   : > { %s1203_s29 = sand.u32 1, %s963_s19   ;;  %p1308_p6 = scmp.ne.s32.totalorder %s1295_s14, 0 }
  0x85   : > { %944 = vsyncadd (%p1307_p12), [#allocation6], 4294967280  ;;  %s674_s11 = sshll.u32 %s1203_s29, 2  ;;  %s277_s13 = scalar_lea.sflag [#allocation3], %s1203_s29 }
  0x86   : > { %s280_s23 = scalar_lea.vmem [#allocation8], %s674_s11 }
  0x87   : > { %946 = dma.done.wait (%p1308_p6), %s277_s13, 64  }
  0x88   : > { %948 = vsyncadd (%p1308_p6), %s277_s13, 4294967232  ;;  %s285_s20 = sand.u32 1, %s1092_s9   ;;  %s289_s25 = scalar_lea.vmem [#allocation9], %s674_s11 }
  0x89   : > { %s286_s21 = scalar_lea.sflag [#allocation10], %s285_s20 }
  0x8a   : > { %950 = dma.done.wait (%p1308_p6), %s286_s21, 128  }
  0x8b   : > { %952 = vsyncadd (%p1308_p6), %s286_s21, 4294967168  ;;  %s298_s6 = scalar_lea.vmem [#allocation11], %s674_s11 }
  0x8c   : > { %303 = sfence }
  0x8d   : > { %v337_v0 = vld [vmem:[%s280_s23] sm:$0xf]  ;;  %v338_v1 = vld [vmem:[%s289_s25] sm:$0xf]  ;;  %v339_v2 = vld [vmem:[%s298_s6] sm:$0xf] }
  0x8e   : > { %v341_v3 = vrot.slane %v337_v0, 1  ;;  %v345_v4 = vrot.slane %v338_v1, 1  ;;  %v349_v5 = vrot.slane %v339_v2, 1  ;;  %v371_v6 = vrot.slane %v337_v0, 2  ;;  %s1216_s12 = sld [smem:[#allocation7]]  ;;  %s683_s1 = sshll.u32 %s1092_s9, 4 }
  0x8f   : > { %v374_v7 = vrot.slane %v338_v1, 2  ;;  %v377_v8 = vrot.slane %v339_v2, 2  ;;  %v398_v9 = vrot.slane %v337_v0, 3  ;;  %v401_v10 = vrot.slane %v338_v1, 3  ;;  %s678_s16 = sld [smem:[#allocation7 + $0x1]]  ;;  %s334_s3 = scalar_lea.vmem [#allocation12], %s1203_s29 }
  0x90   : > { %v343_v11 = vsub.f32 %v337_v0, %v341_v3  ;;  %v347_v12 = vsub.f32 %v338_v1, %v345_v4  ;;  %v351_v13 = vsub.f32 %v339_v2, %v349_v5  ;;  %v373_v14 = vsub.f32 %v337_v0, %v371_v6  ;;  %s679_s14 = sld [smem:[#allocation7 + $0x2]]  ;;  %s527_s27 = sshll.u32 %s334_s3, 4  ;;  %s528_s27 = int_to_ptr.vmem [resolvable:$true] %s527_s27 }
  0x91   : > { %v376_v15 = vsub.f32 %v338_v1, %v374_v7  ;;  %v379_v16 = vsub.f32 %v339_v2, %v377_v8  ;;  %v400_v17 = vsub.f32 %v337_v0, %v398_v9  ;;  %v403_v18 = vsub.f32 %v338_v1, %v401_v10  ;;  %s1218_s24 = sld [smem:[#allocation7 + $0x3]]  ;;  %s1233_s22 = scalar_lea.hbm %s1275_s5, %s683_s1 }
  0x92   : > { %v352_v19 = vmul.f32 %v343_v11, %v343_v11  ;;  %v353_v20 = vmul.f32 %v347_v12, %v347_v12  ;;  %v355_v21 = vmul.f32 %v351_v13, %v351_v13  ;;  %s1220_s30 = sld [smem:[#allocation7 + $0x4]]  ;;  %v380_v22 = vmul.f32 %v373_v14, %v373_v14  ;;  %s515_s11 = scalar_lea.sflag [#allocation4], %s1203_s29 }
  0x93   : > { %v381_v23 = vmul.f32 %v376_v15, %v376_v15  ;;  %v383_v24 = vmul.f32 %v379_v16, %v379_v16  ;;  %v404_v25 = vrot.slane %v339_v2, 3  ;;  %s682_s7 = sld [smem:[#allocation7 + $0x5]]  ;;  %v407_v27 = vmul.f32 %v400_v17, %v400_v17  ;;  %s895_s13 = scalar_lea.vmem %s528_s27, 16 }
  0x94   : > { %v354_v26 = vadd.f32 %v353_v20, %v352_v19  ;;  %v408_v28 = vmul.f32 %v403_v18, %v403_v18  ;;  %v428_v29 = vstv %s1216_s12  ;;  %s335_s26 = sld [smem:[#allocation2]]  ;;  %p896_p4 = scmp.ne.s32.totalorder %s528_s27, %s895_s13 }
  0x95   : > { %v382_v30 = vadd.f32 %v381_v23, %v380_v22  ;;  %v406_v31 = vsub.f32 %v339_v2, %v404_v25  ;;  %v429_v32 = vsub.f32 %v337_v0, %v428_v29  ;;  %v430_v33 = vstv %s678_s16  ;;  %s1225_s15 = sld [smem:[#allocation2 + $0x1]]  ;;  %p1309_p7 = scmp.ne.s32.totalorder %s1297_s8, 0 }
  0x96   : > { %v356_v34 = vadd.f32 %v355_v21, %v354_v26  ;;  %v409_v35 = vadd.f32 %v408_v28, %v407_v27  ;;  %v431_v36 = vsub.f32 %v338_v1, %v430_v33  ;;  %v432_v37 = vstv %s679_s14  ;;  %s978_s23 = smov [#allocation12]  }
  0x97   : > { %v384_v38 = vadd.f32 %v383_v24, %v382_v30  ;;  %v410_v39 = vmul.f32 %v406_v31, %v406_v31  ;;  %v433_v40 = vsub.f32 %v339_v2, %v432_v37  ;;  %v434_v41 = vmul.f32 %v429_v32, %v429_v32  ;;  %p897_p0 = pnand %p896_p4, %p1309_p7  ;;  %s899_s20 = sshll.u32 %s978_s23, 4  ;;  %s900_s20 = int_to_ptr.vmem [resolvable:$false] %s899_s20 }
  0x98   : > { %763 = vrsqrt.f32 %v356_v34  ;;  %v435_v43 = vmul.f32 %v431_v36, %v431_v36  ;;  %v455_v45 = vstv %s1218_s24  ;;  %v457_v46 = vstv %s1220_s30  ;;  %s901_s9 = scalar_lea.vmem %s900_s20, 32  ;;  %p902_p1 = scmp.lt.s32.totalorder %s528_s27, %s900_s20 }
  0x99   : > { %765 = vrsqrt.f32 %v384_v38  ;;  %v411_v42 = vadd.f32 %v410_v39, %v409_v35  ;;  %v437_v44 = vmul.f32 %v433_v40, %v433_v40  ;;  %v459_v47 = vstv %s682_s7  ;;  %p898_p13 = pneg %p897_p0  ;;  %p903_p5 = scmp.lt.s32.totalorder %s901_s9, %s895_s13 }
  0x9a   : > { %v436_v48 = vadd.f32 %v435_v43, %v434_v41  ;;  %v456_v49 = vsub.f32 %v337_v0, %v455_v45  ;;  %v458_v50 = vsub.f32 %v338_v1, %v457_v46  ;;  %v460_v51 = vsub.f32 %v339_v2, %v459_v47 }
  0x9b   : > { %767 = vrsqrt.f32 %v411_v42  ;;  %vm359_vm0 = vcmp.eq.f32.partialorder %v356_v34, inf  ;;  %vm361_vm1 = vcmp.eq.f32.partialorder %v356_v34, 0.0  ;;  %v362_v59 = vand.u32 2147483648, %v356_v34  ;;  %p904_p9 = por %p903_p5, %p902_p1 }
  0x9c   : > { %v438_v52 = vadd.f32 %v437_v44, %v436_v48  ;;  %v461_v53 = vmul.f32 %v456_v49, %v456_v49  ;;  %v462_v54 = vmul.f32 %v458_v50, %v458_v50  ;;  %v464_v55 = vmul.f32 %v460_v51, %v460_v51 }
  0x9d   : > { %vm387_vm2 = vcmp.eq.f32.partialorder %v384_v38, inf  ;;  %v390_v62 = vand.u32 2147483648, %v384_v38  ;;  %v364_v63 = vstv %s335_s26  ;;  %vm389_vm3 = vcmp.eq.f32.partialorder %v384_v38, 0.0  ;;  %p905_p10 = pnand %p904_p9, %p898_p13 }
  0x9e   : > { %769 = vrsqrt.f32 %v438_v52  ;;  %v463_v56 = vadd.f32 %v462_v54, %v461_v53  ;;  %vm414_vm4 = vcmp.eq.f32.partialorder %v411_v42, inf  ;;  %v417_v5 = vand.u32 2147483648, %v411_v42 }
  0x9f   : > { %vm416_vm5 = vcmp.eq.f32.partialorder %v411_v42, 0.0  ;;  %vm441_vm6 = vcmp.eq.f32.partialorder %v438_v52, inf  ;;  %v444_v16 = vand.u32 2147483648, %v438_v52  ;;  %vm443_vm7 = vcmp.eq.f32.partialorder %v438_v52, 0.0 }
  0xa0   : > { %v465_v57 = vadd.f32 %v464_v55, %v463_v56  ;;  %v446_v19 = vstv %s1225_s15 }
  0xa2   : > { %771 = vrsqrt.f32 %v465_v57  ;;  %vm468_vm8 = vcmp.eq.f32.partialorder %v465_v57, inf  ;;  %v471_v24 = vand.u32 2147483648, %v465_v57  ;;  %vm470_vm9 = vcmp.eq.f32.partialorder %v465_v57, 0.0 }
  0xa5   : > { %v764_v58 = vpop.eup %763 }
  0xa6   : > { %v766_v60 = vpop.eup %765  ;;  %v358_v61 = vmul.f32 %v764_v58, %v356_v34 }
  0xa7   : > { %v386_v0 = vmul.f32 %v766_v60, %v384_v38 }
  0xa8   : > { %v360_v1 = vsel %vm359_vm0, %v356_v34, %v358_v61  ;;  %v768_v2 = vpop.eup %767 }
  0xa9   : > { %v363_v3 = vsel %vm361_vm1, %v362_v59, %v360_v1  ;;  %v388_v4 = vsel %vm387_vm2, %v384_v38, %v386_v0  ;;  %v413_v8 = vmul.f32 %v768_v2, %v411_v42 }
  0xaa   : > { %v365_v6 = vmul.f32 %v364_v63, %v363_v3  ;;  %v391_v7 = vsel %vm389_vm3, %v390_v62, %v388_v4 }
  0xab   : > { %v392_v9 = vmul.f32 %v391_v7, %v364_v63  ;;  %v415_v11 = vsel %vm414_vm4, %v411_v42, %v413_v8  ;;  %v770_v14 = vpop.eup %769 }
  0xac   : > { %v366_v10 = vadd.f32 1.0, %v365_v6  ;;  %v418_v13 = vsel %vm416_vm5, %v417_v5, %v415_v11  ;;  %v440_v17 = vmul.f32 %v770_v14, %v438_v52 }
  0xad   : > { %v393_v12 = vadd.f32 1.0, %v392_v9  ;;  %v419_v15 = vmul.f32 %v418_v13, %v364_v63 }
  0xae   : > { %773 = vrcp.f32 %v366_v10  ;;  %v442_v20 = vsel %vm441_vm6, %v438_v52, %v440_v17 }
  0xaf   : > { %775 = vrcp.f32 %v393_v12  ;;  %v420_v18 = vadd.f32 1.0, %v419_v15  ;;  %v445_v21 = vsel %vm443_vm7, %v444_v16, %v442_v20  ;;  %v772_v22 = vpop.eup %771 }
  0xb0   : > { %v447_v23 = vmul.f32 %v446_v19, %v445_v21  ;;  %v467_v25 = vmul.f32 %v772_v22, %v465_v57 }
  0xb1   : > { %777 = vrcp.f32 %v420_v18 }
  0xb2   : > { %v448_v26 = vadd.f32 1.0, %v447_v23  ;;  %v469_v27 = vsel %vm468_vm8, %v465_v57, %v467_v25 }
  0xb3   : > { %v472_v28 = vsel %vm470_vm9, %v471_v24, %v469_v27 }
  0xb4   : > { %779 = vrcp.f32 %v448_v26  ;;  %v473_v29 = vmul.f32 %v472_v28, %v446_v19 }
  0xb6   : > { %v474_v30 = vadd.f32 1.0, %v473_v29 }
  0xb8   : > { %781 = vrcp.f32 %v474_v30 }
  0xbb   : > { %v774_v31 = vpop.eup %773 }
  0xbc   : > { %v776_v32 = vpop.eup %775  ;;  %v368_v33 = vmul.f32 %v774_v31, %v363_v3 }
  0xbd   : > { %v395_v34 = vmul.f32 %v776_v32, %v391_v7 }
  0xbe   : > { %v369_v35 = vmul.f32 0.25, %v368_v33  ;;  %v778_v36 = vpop.eup %777  ;;  %v478_v44 = vmul.f32 0.5, %v368_v33 }
  0xbf   : > { %v396_v37 = vmul.f32 0.5, %v395_v34  ;;  %v422_v38 = vmul.f32 %v778_v36, %v418_v13 }
  0xc0   : > { %v480_v48 = vrot.slane %v478_v44, 1  ;;  %v496_v56 = vrot.slane %v369_v35, 2 }
  0xc1   : > { %v397_v39 = vadd.f32 %v396_v37, %v369_v35  ;;  %v423_v40 = vmul.f32 0.5, %v422_v38  ;;  %v780_v41 = vpop.eup %779  ;;  %v484_v50 = vrot.slane %v396_v37, 1 }
  0xc2   : > { %v450_v43 = vmul.f32 %v780_v41, %v445_v21 }
  0xc3   : > { %v424_v42 = vadd.f32 %v423_v40, %v397_v39 }
  0xc4   : > { %v488_v52 = vrot.slane %v450_v43, 1  ;;  %v499_v58 = vrot.slane %v450_v43, 2  ;;  %v505_v62 = vrot.slane %v450_v43, 3 }
  0xc5   : > { %v451_v45 = vsub.f32 %v424_v42, %v450_v43  ;;  %v782_v46 = vpop.eup %781 }
  0xc6   : > { %v476_v47 = vmul.f32 %v782_v46, %v472_v28 }
  0xc8   : > { %v477_v49 = vsub.f32 %v451_v45, %v476_v47  ;;  %v492_v54 = vrot.slane %v476_v47, 1  ;;  %v502_v60 = vrot.slane %v476_v47, 2  ;;  %v508_v0 = vrot.slane %v476_v47, 3 }
  0xca   : > { %v482_v51 = vadd.f32 %v480_v48, %v477_v49 }
  0xcc   : > { %v486_v53 = vadd.f32 %v484_v50, %v482_v51 }
  0xce   : > { %v490_v55 = vsub.f32 %v486_v53, %v488_v52 }
  0xd0   : > { %v494_v57 = vsub.f32 %v490_v55, %v492_v54 }
  0xd2   : > { %v498_v59 = vadd.f32 %v496_v56, %v494_v57 }
  0xd4   : > { %v501_v61 = vsub.f32 %v498_v59, %v499_v58 }
  0xd6   : > { %v504_v63 = vsub.f32 %v501_v61, %v502_v60 }
  0xd8   : > { %v507_v1 = vsub.f32 %v504_v63, %v505_v62 }
  0xda   : > { %v510_v2 = vsub.f32 %v507_v1, %v508_v0 }
  0xdc   : > { %v511_v3 = vmul.f32 1.442695, %v510_v2 }
  0xde   : > { %783 = vpow2.f32 %v511_v3 }
  0xeb   : > { %v784_v4 = vpop.eup %783 }
  0xec   : > { %513 = vst [vmem:[%s334_s3] sm:$0x1] %v784_v4 }
  0xed   : > { %908 = shalt.err (!%p905_p10)
}
  0xee   : > { %s909_s21 = scalar_lea.hbm %s1233_s22, 16  ;;  %s913_s6 = scalar_lea.hbm %s1275_s5, 32 }
  0xef   : > { %p910_p11 = scmp.ne.s32.totalorder %s1233_s22, %s909_s21  ;;  %p914_p2 = scmp.lt.s32.totalorder %s1233_s22, %s1275_s5 }
  0xf0   : > { %p915_p12 = scmp.lt.s32.totalorder %s913_s6, %s909_s21 }
  0xf1   : > { %p911_p3 = pnand %p910_p11, %p1309_p7 }
  0xf2   : > { %p916_p6 = por %p915_p12, %p914_p2 }
  0xf3   : > { %p912_p8 = pneg %p911_p3 }
  0xf5   : > { %p917_p4 = pnand %p916_p6, %p912_p8 }
  0xf7   : > { %920 = shalt.err (!%p917_p4)
}
  0xf8   : > { %700 = dma.vmem_to_hbm [thread:$0]  (%p1309_p7), %s528_s27, 16, %s1233_s22, %s515_s11  }
  0xf9 PF: > { %s1310_s14 = sld [smem:[#allocation19_spill]]  ;;  %s539_s24 = sand.u32 1, %s959_s18  }
  0xfa   : > { %p1311_p0 = scmp.ne.s32.totalorder %s1298_s10, 0  ;;  %s540_s30 = scalar_lea.sflag [#allocation4], %s539_s24 }
  0xff   : > { %p1312_p13 = scmp.ge.s32.totalorder %s1310_s14, 2 }
 0x101   : > { %p720_p1 = pnand %p1312_p13, %p1311_p0 }
 0x103   : > { %p721_p5 = pneg %p720_p1 }
 0x105   : > { %954 = dma.done.wait (%p721_p5), %s540_s30, 16  }
 0x106   : > { %956 = vsyncadd (%p721_p5), %s540_s30, 4294967280  ;;  %s1313_s21 = sld [smem:[#allocation20_spill]]  ;;  %s1316_s18 = smov %s963_s19 }
 0x107   : > { %s1314_s7 = sld [smem:[#allocation18_spill]] }
 0x108   : > { %s1315_s20 = sld [smem:[#allocation21_spill]] }
 0x10c   : > { %p23_p9 = scmp.ge.s32.totalorder %s1313_s21, 4  }
 0x10d   : > { %s1317_s19 = smov %s1314_s7 }
 0x10e   :  { %25 = sbr.rel (!%p23_p9) target bundleno = 12 (0xc), region = 119 }
 0x113   :  { %544 = vsyncpa [#allocation3], 1 }
 0x114   :  { %546 = vsyncpa [#allocation3 + $0x1], 1 }
 0x115   :  { %547 = vsyncpa [#allocation10], 1 }
 0x116   :  { %549 = vsyncpa [#allocation10 + $0x1], 1 }
 0x117   :  { %550 = vsyncpa [#allocation4], 1 }
 0x118   :  { %552 = vsyncpa [#allocation4 + $0x1], 1 }
 0x119   :  { %553 = vsyncpa [#allocation5], 1 }
 0x11a   :  { %555 = vsyncpa [#allocation5 + $0x1], 1 }
 0x11b   :  { %556 = vsyncpa [#allocation6], 1 }
 0x11c   :  { %558 = vsyncpa [#allocation6 + $0x1], 1 }

</bundles_post_ra>
